<compile_context>
chip_gen: v7x
topology: tpu7x:2x2x1
jax: 0.10.0
libtpu: 0.0.40
codegen_flags: <defaults>
</compile_context>

<pallas_src>
import functools

import jax
import jax.numpy as jnp
from jax import lax
from jax.experimental import pallas as pl
from jax.experimental.pallas import tpu as pltpu


def _round_up(x, m):
    return ((x + m - 1) // m) * m


# ----------------------------- Pallas kernel ------------------------------ #
def _pconv_kernel(xcol_ref, msum_ref, w_ref, b_ref, o_ref, *, slide_winsize):
    # xcol_ref: (TM, Cin*K*K)    masked-input patches (compute dtype, e.g. bf16)
    # msum_ref: (TM, 1)          per-window mask sum (f32)
    # w_ref:    (Cin*K*K, Cout_pad)  resident across the M grid
    # b_ref:    (1, Cout_pad)        resident across the M grid (f32)
    # o_ref:    (TM, Cout_pad)
    acc = jnp.dot(xcol_ref[...], w_ref[...], preferred_element_type=jnp.float32)

    msum = msum_ref[...]                                   # (TM, 1) f32
    update_mask = jnp.clip(msum, 0.0, 1.0)
    # divide -> EUP reciprocal (free VLIW slot); folded with umask
    mask_ratio = (slide_winsize * update_mask) * pl.reciprocal(
        msum + 1e-8, approx=True)

    # ((raw - b) * ratio + b) * umask, with raw = acc + b  =>
    out = (acc * mask_ratio + b_ref[...]) * update_mask
    o_ref[...] = out.astype(o_ref.dtype)


# ------------------------------- JAX glue --------------------------------- #
def _im2col(x, k, pad):
    """x: (N, C, H, W) -> (N*Ho*Wo, C*k*k), flatten order (C, kh, kw)."""
    n, c, h, w = x.shape
    xp = jnp.pad(x, ((0, 0), (0, 0), (pad, pad), (pad, pad)))
    ho, wo = h + 2 * pad - k + 1, w + 2 * pad - k + 1
    patches = []
    for i in range(k):
        for j in range(k):
            patches.append(xp[:, :, i:i + ho, j:j + wo])              # (N,C,Ho,Wo)
    p = jnp.stack(patches, axis=0).reshape(k, k, n, c, ho, wo)
    p = jnp.transpose(p, (2, 4, 5, 3, 0, 1))                          # N,Ho,Wo,C,kh,kw
    return p.reshape(n * ho * wo, c * k * k), (n, ho, wo)


def _mask_window_sum(mask, k, pad):
    """conv(mask, ones(1,1,k,k)) via shifted-slice sums -> (N*Ho*Wo, 1)."""
    n, c, h, w = mask.shape
    mp = jnp.pad(mask, ((0, 0), (0, 0), (pad, pad), (pad, pad)))
    ho, wo = h + 2 * pad - k + 1, w + 2 * pad - k + 1
    s = jnp.zeros((n, c, ho, wo), jnp.float32)
    for i in range(k):
        for j in range(k):
            s = s + mp[:, :, i:i + ho, j:j + wo].astype(jnp.float32)
    s = jnp.transpose(s, (0, 2, 3, 1))                                # N,Ho,Wo,1
    return s.reshape(n * ho * wo, 1)


def partial_conv2d(x, mask, weight, bias, *, stride=1, padding=1,
                   compute_dtype=jnp.bfloat16, tm=512, cout_align=128):
    """x: (N,Cin,H,W), mask: (N,1,H,W), weight: (Cout,Cin,K,K), bias: (Cout,)."""
    assert stride == 1, "kernel implements stride=1 (module default)"
    cout, cin, k, _ = weight.shape
    slide_winsize = float(1 * k * k)   # multi_channel=False -> ones(1,1,k,k)

    xcol, (n, ho, wo) = _im2col(x * mask, k, padding)                 # (M, Cin*K*K)
    msum = _mask_window_sum(mask, k, padding)                         # (M, 1) f32

    m = n * ho * wo
    ckk = cin * k * k

    # Tile sizing: TM rows per grid step (multiple of the sublane pack), pad M
    # so TM divides it; pad Cout to a lane-dense multiple of 128.
    sub = 16 if jnp.dtype(compute_dtype) == jnp.dtype(jnp.bfloat16) else 8
    tm = max(sub, min(tm, _round_up(m, sub)))
    m_pad = _round_up(m, tm)
    cout_pad = _round_up(cout, cout_align)

    xcol = jnp.pad(xcol, ((0, m_pad - m), (0, 0))).astype(compute_dtype)
    msum = jnp.pad(msum, ((0, m_pad - m), (0, 0)))
    w_col = weight.reshape(cout, ckk).T                               # (Ckk, Cout)
    w_col = jnp.pad(w_col, ((0, 0), (0, cout_pad - cout))).astype(compute_dtype)
    b_row = jnp.pad(bias.reshape(1, cout).astype(jnp.float32),
                    ((0, 0), (0, cout_pad - cout)))

    grid = (m_pad // tm,)
    kernel = functools.partial(_pconv_kernel, slide_winsize=slide_winsize)
    out_flat = pl.pallas_call(
        kernel,
        out_shape=jax.ShapeDtypeStruct((m_pad, cout_pad), x.dtype),
        grid=grid,
        in_specs=[
            pl.BlockSpec((tm, ckk), lambda i: (i, 0)),        # streamed xcol
            pl.BlockSpec((tm, 1), lambda i: (i, 0)),          # streamed msum
            pl.BlockSpec((ckk, cout_pad), lambda i: (0, 0)),  # resident weight
            pl.BlockSpec((1, cout_pad), lambda i: (0, 0)),    # resident bias
        ],
        out_specs=pl.BlockSpec((tm, cout_pad), lambda i: (i, 0)),
        compiler_params=pltpu.CompilerParams(
            dimension_semantics=("parallel",),        # shards over 2 TCs on v7x
            vmem_limit_bytes=32 * 1024 * 1024,        # safe on v5e/v6e/v7x
        ),
    )(xcol, msum, w_col, b_row)

    out = out_flat[:m, :cout].reshape(n, ho, wo, cout)
    # NOTE: NHWC is the lane-friendly layout; transpose kept to match the
    # PyTorch NCHW contract.
    return jnp.transpose(out, (0, 3, 1, 2))                           # NCHW


# ------------------------------ reference --------------------------------- #
def partial_conv2d_ref(x, mask, weight, bias, *, padding=1, compute_dtype=None):
    """Pure-JAX reference. compute_dtype (optional) pre-rounds the matmul
    operands the same way the kernel does, isolating kernel correctness from
    bf16 quantization."""
    k = weight.shape[-1]
    xm = x * mask
    w = weight
    if compute_dtype is not None:
        xm = xm.astype(compute_dtype).astype(jnp.float32)
        w = w.astype(compute_dtype).astype(jnp.float32)
    dn = ("NCHW", "OIHW", "NCHW")
    raw = lax.conv_general_dilated(xm, w, (1, 1), [(padding, padding)] * 2,
                                   dimension_numbers=dn) + bias[None, :, None, None]
    ones_k = jnp.ones((1, 1, k, k), jnp.float32)
    msum = lax.conv_general_dilated(mask.astype(jnp.float32), ones_k, (1, 1),
                                    [(padding, padding)] * 2,
                                    dimension_numbers=dn)
    slide = float(k * k)
    ratio = slide / (msum + 1e-8)
    umask = jnp.clip(msum, 0.0, 1.0)
    ratio = ratio * umask
    b = bias[None, :, None, None]
    return ((raw - b) * ratio + b) * umask


# --------------------------------- main ------------------------------------ #
if __name__ == "__main__":
    key = jax.random.PRNGKey(0)
    kx, km, kw, kb = jax.random.split(key, 4)

    N, CIN, COUT, H, W, K = 2, 4, 8, 16, 16, 3
    x = jax.random.normal(kx, (N, CIN, H, W), dtype=jnp.float32)
    mask = (jax.random.uniform(km, (N, 1, H, W)) > 0.3).astype(jnp.float32)
    weight = jax.random.normal(kw, (COUT, CIN, K, K), dtype=jnp.float32) * 0.1
    bias = jax.random.normal(kb, (COUT,), dtype=jnp.float32) * 0.1

    # tm=128 exercises a multi-step grid at this demo size (M = 2*16*16 = 512);
    # at production sizes use the default tm=512 (or 1024 on v5e/v6e).
    fn = jax.jit(functools.partial(partial_conv2d, tm=128))
    out = jax.block_until_ready(fn(x, mask, weight, bias))

    ref = partial_conv2d_ref(x, mask, weight, bias, compute_dtype=jnp.bfloat16)
    assert out.shape == (N, COUT, H, W)
    max_err = float(jnp.max(jnp.abs(out - ref)))
    assert jnp.allclose(out, ref, atol=2e-2, rtol=2e-2), (
        f"mismatch vs reference, max abs err = {max_err}")
    print("KERNEL_OK")
</pallas_src>

<mosaic_0001>
module attributes {stable_mosaic.version = 11 : i64} {
  func.func @_pconv_kernel(%arg0: i32, %arg1: memref<128x36xbf16, #tpu.memory_space<vmem>>, %arg2: memref<128x1xf32, #tpu.memory_space<vmem>>, %arg3: memref<36x128xbf16, #tpu.memory_space<vmem>>, %arg4: memref<1x128xf32, #tpu.memory_space<vmem>>, %arg5: memref<128x128xf32, #tpu.memory_space<vmem>>) attributes {dimension_semantics = [#tpu.dimension_semantics<parallel>], iteration_bounds = array<i64: 4>, scalar_prefetch = 0 : i64, scratch_operands = 0 : i64, tpu.core_type = #tpu.core_type<tc>, window_params = [{transform_indices = @transform_0, window_bounds = array<i64: 128, 36>}, {transform_indices = @transform_1, window_bounds = array<i64: 128, 1>}, {pipeline_mode = #tpu.pipeline_mode<synchronous>, transform_indices = @transform_2, window_bounds = array<i64: 36, 128>}, {pipeline_mode = #tpu.pipeline_mode<synchronous>, transform_indices = @transform_3, window_bounds = array<i64: 1, 128>}, {transform_indices = @transform_4, window_bounds = array<i64: 128, 128>}]} {
    %c0 = arith.constant 0 : index
    %c0_0 = arith.constant 0 : index
    %0 = vector.load %arg1[%c0, %c0_0] : memref<128x36xbf16, #tpu.memory_space<vmem>>, vector<128x36xbf16>
    %c0_1 = arith.constant 0 : index
    %c0_2 = arith.constant 0 : index
    %1 = vector.load %arg3[%c0_1, %c0_2] : memref<36x128xbf16, #tpu.memory_space<vmem>>, vector<36x128xbf16>
    %cst = arith.constant dense<0.000000e+00> : vector<128x128xf32>
    %2 = tpu.matmul %0, %1, %cst {dimension_numbers = #tpu.dot_dimension_numbers<[1], [0], [0], [1], [0, 0, 1, 1], [], []>} : vector<128x36xbf16>, vector<36x128xbf16>, vector<128x128xf32> -> vector<128x128xf32>
    %c0_3 = arith.constant 0 : index
    %c0_4 = arith.constant 0 : index
    %3 = vector.load %arg2[%c0_3, %c0_4] : memref<128x1xf32, #tpu.memory_space<vmem>>, vector<128x1xf32>
    %cst_5 = arith.constant 0.000000e+00 : f32
    %cst_6 = arith.constant 1.000000e+00 : f32
    %4 = vector.broadcast %cst_5 : f32 to vector<128x1xf32>
    %5 = arith.maximumf %4, %3 : vector<128x1xf32>
    %6 = vector.broadcast %cst_6 : f32 to vector<128x1xf32>
    %7 = arith.minimumf %6, %5 : vector<128x1xf32>
    %cst_7 = arith.constant 9.000000e+00 : f32
    %8 = vector.broadcast %cst_7 : f32 to vector<128x1xf32>
    %9 = arith.mulf %8, %7 : vector<128x1xf32>
    %cst_8 = arith.constant 9.99999993E-9 : f32
    %10 = vector.broadcast %cst_8 : f32 to vector<128x1xf32>
    %11 = arith.addf %3, %10 : vector<128x1xf32>
    %12 = tpu.reciprocal %11 {approx = true} : vector<128x1xf32> -> vector<128x1xf32>
    %13 = arith.mulf %9, %12 : vector<128x1xf32>
    %14 = vector.broadcast %13 : vector<128x1xf32> to vector<128x128xf32>
    %15 = arith.mulf %2, %14 : vector<128x128xf32>
    %c0_9 = arith.constant 0 : index
    %c0_10 = arith.constant 0 : index
    %16 = vector.load %arg4[%c0_9, %c0_10] : memref<1x128xf32, #tpu.memory_space<vmem>>, vector<1x128xf32>
    %17 = vector.broadcast %16 : vector<1x128xf32> to vector<128x128xf32>
    %18 = arith.addf %15, %17 : vector<128x128xf32>
    %19 = vector.broadcast %7 : vector<128x1xf32> to vector<128x128xf32>
    %20 = arith.mulf %18, %19 : vector<128x128xf32>
    %c0_11 = arith.constant 0 : index
    %c0_12 = arith.constant 0 : index
    %21 = vector.load %arg5[%c0_11, %c0_12] : memref<128x128xf32, #tpu.memory_space<vmem>>, vector<128x128xf32>
    tpu.vector_store %arg5[%c0_11, %c0_12], %20 {strides = array<i32>} : memref<128x128xf32, #tpu.memory_space<vmem>>, vector<128x128xf32>,
    return
  }
  func.func @transform_0(%arg0: i32) -> (i32, i32) {
    %c0_i32 = arith.constant 0 : i32
    %c0_i32_0 = arith.constant 0 : i32
    return %arg0, %c0_i32 : i32, i32
  }
  func.func @transform_1(%arg0: i32) -> (i32, i32) {
    %c0_i32 = arith.constant 0 : i32
    %c0_i32_0 = arith.constant 0 : i32
    return %arg0, %c0_i32 : i32, i32
  }
  func.func @transform_2(%arg0: i32) -> (i32, i32) {
    %c0_i32 = arith.constant 0 : i32
    %c0_i32_0 = arith.constant 0 : i32
    %c0_i32_1 = arith.constant 0 : i32
    return %c0_i32, %c0_i32_0 : i32, i32
  }
  func.func @transform_3(%arg0: i32) -> (i32, i32) {
    %c0_i32 = arith.constant 0 : i32
    %c0_i32_0 = arith.constant 0 : i32
    %c0_i32_1 = arith.constant 0 : i32
    return %c0_i32, %c0_i32_0 : i32, i32
  }
  func.func @transform_4(%arg0: i32) -> (i32, i32) {
    %c0_i32 = arith.constant 0 : i32
    %c0_i32_0 = arith.constant 0 : i32
    return %arg0, %c0_i32 : i32, i32
  }
}

</mosaic_0001>

<bundles_post_ra>
// kernel: partial_conv2d.1
= control target key start
LH: loop header
LB: loop body
LE: loop exit
PB: predicated region body
PF: predicated region fallthrough
CT: control target
= control target key end

     0   :  { %s999_s15 = smov 0   ;;  %s1174_s0 = inlined_call_operand.vmem [shape: bf16[512,36], index: 0, kind: input, shape index: {}]   ;;  %s1175_s1 = inlined_call_operand.vmem [shape: f32[512,1], index: 1, kind: input, shape index: {}]   ;;  %s1176_s2 = inlined_call_operand.vmem [shape: bf16[36,128], index: 2, kind: input, shape index: {}]   ;;  %s1177_s3 = inlined_call_operand.vmem [shape: f32[1,128], index: 3, kind: input, shape index: {}]   ;;  %s1178_s4 = inlined_call_operand.vmem [shape: f32[512,128], index: 4, kind: output, shape index: {}]  }
   0x1 LB: > { %s837_s16 = sadd.s32 4294967295, %s971_s15   ;;  %p841_p0 = scmp.ge.s32.totalorder %s971_s15, 1  ;;  %s971_s15 = sphi %s999_s15, %s14_s15  }
   0x2   : > { %p174_p1 = scmp.lt.s32.totalorder %s971_s15, 5 }
   0x4   : > { %p175_p2 = pnand %p841_p0, %p174_p1 }
   0x5   : > { %v922_v0 = vld [vmem:[%s1176_s2] sm:$0xff] (!%p175_p2)   ;;  %v923_v1 = vld [vmem:[%s1176_s2 + $0x8] sm:$0xff] (!%p175_p2)   ;;  %s842_s21 = sshll.u32 (!%p175_p2), %s837_s16, 4  ;;  %v924_v2 = vld [vmem:[%s1176_s2 + $0x10] ss:$0 sps:$4 sm:$0x33] (!%p175_p2)  }
   0x6   : > { %178 = sbr.rel (%p175_p2) target bundleno = 249 (0xf9), region = 36  ;;  %881 = vmatprep.subr.bf16.mxu0 (!%p175_p2), %v922_v0  ;;  %903 = vmatprep.subr.bf16.mxu1 (!%p175_p2), %v922_v0  ;;  %p206_p3 = scmp.lt.s32.totalorder (!%p175_p2), %s842_s21, 63  ;;  %vm325_vm0 = vcmask (!%p175_p2), 1041408   ;;  %v973_v3 = vmov (!%p175_p2), 0   ;;  %vm300_vm1 = vcmask (!%p175_p2), 293888  }
   0x7   : > { %882 = vmatpush3.bf16.msra.mxu0 (!%p175_p2), %v922_v0  ;;  %906 = vmatpush3.bf16.msra.mxu1 (!%p175_p2), %v922_v0  ;;  %v327_v4 = vsel (!%p175_p2), %vm325_vm0, %v924_v2, 0 }
   0x8   : > { %883 = vmatprep.subr.bf16.mxu0 (!%p175_p2), %v923_v1  ;;  %904 = vmatprep.subr.bf16.mxu1 (!%p175_p2), %v923_v1 }
   0x9   : > { %921 = vset.pattern.permute.xlu1 (!%p175_p2), %v973_v3  ;;  %920 = vset.pattern.permute.xlu0 (!%p175_p2), %v973_v3 }
   0xb   : > { %884 = vmatpush3.bf16.msra.mxu0 (!%p175_p2), %v923_v1  ;;  %907 = vmatpush3.bf16.msra.mxu1 (!%p175_p2), %v923_v1 }
   0xc   : > { %909 = vmatprep.subr.msk.bf16.mxu0 (!%p175_p2), %vm325_vm0, %v924_v2  ;;  %910 = vmatprep.subr.msk.bf16.mxu1 (!%p175_p2), %vm325_vm0, %v924_v2 }
   0xd   : > { %s1180_s21 = smov (!%p206_p3, %s842_s21), 63 }
   0xe   : > { %s843_s24 = sshll.u32 %s1180_s21, 2  ;;  %s845_s28 = sshll.u32 %s1180_s21, 3 }
   0xf   : > { %s209_s27 = scalar_lea.vmem %s1174_s0, %s843_s24  ;;  %886 = vmatpush3.bf16.msra.mxu0 %v327_v4  ;;  %908 = vmatpush3.bf16.msra.mxu1 %v327_v4  ;;  %s1029_s5 = scalar_lea.vmem %s1175_s1, %s845_s28 }
  0x10   : > { %v925_v5 = vld [vmem:[%s209_s27] sm:$0xff]   ;;  %v927_v7 = vld [vmem:[%s209_s27 + $0x8] sm:$0xff]   ;;  %v929_v9 = vld [vmem:[%s209_s27 + $0x10] sm:$0xff]   ;;  %s1128_s10 = scalar_lea.vmem %s1178_s4, %s845_s28 }
  0x11   : > { %v926_v6 = vld [vmem:[%s209_s27 + $0x20] sm:$0xff]   ;;  %887 = vmatprep.mubr.msk.bf16.mxu0 %vm300_vm1, %v925_v5  ;;  %v928_v8 = vld [vmem:[%s209_s27 + $0x28] sm:$0xff]   ;;  %v930_v10 = vld [vmem:[%s209_s27 + $0x30] sm:$0xff]  }
  0x12   : > { %895 = vmatprep.mubr.msk.bf16.mxu1 %vm300_vm1, %v926_v6  ;;  %888 = vmatmul.mubr.msk.bf16.vlgmr.msra.gmra.mrb[0].mxu0 %vm300_vm1, %v927_v7  ;;  %v428_v11 = vld [vmem:[%s1029_s5 + $0x10] sm:$0xff]  ;;  %v426_v12 = vld [vmem:[%s1029_s5] sm:$0xff]  ;;  %v931_v16 = vld [vmem:[%s209_s27 + $0x18] sm:$0xff]  }
  0x13   : > { %896 = vmatmul.mubr.msk.bf16.vlgmr.msra.gmra.mrb[0].mxu1 %vm300_vm1, %v928_v8  ;;  %891 = vmatprep.mubr.msk.bf16.mxu0 %vm300_vm1, %v929_v9  ;;  %v492_v13 = vadd.f32 1e-08, %v428_v11  ;;  %v490_v14 = vadd.f32 1e-08, %v426_v12  ;;  %v444_v15 = vmax.f32 %v428_v11, 0.0  ;;  %v442_v17 = vmax.f32 %v426_v12, 0.0 }
  0x14   : > { %899 = vmatprep.mubr.msk.bf16.mxu1 %vm300_vm1, %v930_v10  ;;  %v932_v18 = vld [vmem:[%s209_s27 + $0x38] sm:$0xff]   ;;  %v427_v21 = vld [vmem:[%s1029_s5 + $0x8] sm:$0xff]  ;;  %v430_v23 = vld [vmem:[%s1029_s5 + $0x20] sm:$0xff] }
  0x15   : > { %933 = vrcp.f32 %v492_v13  ;;  %v429_v19 = vld [vmem:[%s1029_s5 + $0x18] sm:$0xff]  ;;  %v431_v22 = vld [vmem:[%s1029_s5 + $0x28] sm:$0xff]  ;;  %v491_v25 = vadd.f32 1e-08, %v427_v21  ;;  %v1042_v26 = vmin.f32 %v444_v15, 1.0  ;;  %v443_v27 = vmax.f32 %v427_v21, 0.0 }
  0x16   : > { %935 = vrcp.f32 %v490_v14  ;;  %v493_v20 = vadd.f32 1e-08, %v429_v19  ;;  %v445_v24 = vmax.f32 %v429_v19, 0.0  ;;  %v495_v28 = vadd.f32 1e-08, %v431_v22  ;;  %v433_v29 = vld [vmem:[%s1029_s5 + $0x38] sm:$0xff] }
  0x17   : > { %v1045_v30 = vmin.f32 %v442_v17, 1.0  ;;  %v494_v31 = vadd.f32 1e-08, %v430_v23  ;;  %v432_v32 = vld [vmem:[%s1029_s5 + $0x30] sm:$0xff]  ;;  %v447_v33 = vmax.f32 %v431_v22, 0.0  ;;  %v435_v34 = vld [vmem:[%s1029_s5 + $0x48] sm:$0xff] }
  0x18   : > { %937 = vrcp.f32 %v493_v20  ;;  %v1051_v35 = vmin.f32 %v445_v24, 1.0  ;;  %v446_v36 = vmax.f32 %v430_v23, 0.0  ;;  %v497_v37 = vadd.f32 1e-08, %v433_v29  ;;  %v434_v41 = vld [vmem:[%s1029_s5 + $0x40] sm:$0xff]  ;;  %v437_v46 = vld [vmem:[%s1029_s5 + $0x58] sm:$0xff] }
  0x19   : > { %939 = vrcp.f32 %v491_v25  ;;  %v476_v38 = vmul.f32 9.0, %v1042_v26  ;;  %v1054_v39 = vmin.f32 %v443_v27, 1.0  ;;  %v496_v40 = vadd.f32 1e-08, %v432_v32  ;;  %v436_v52 = vld [vmem:[%s1029_s5 + $0x50] sm:$0xff]  ;;  %v439_v63 = vld [vmem:[%s1029_s5 + $0x68] sm:$0xff] }
  0x1a   : > { %892 = vmatmul.mubr.msk.bf16.gmra.mrb[4].mxu0 %vm300_vm1, %v931_v16  ;;  %941 = vrcp.f32 %v495_v28  ;;  %v474_v42 = vmul.f32 9.0, %v1045_v30  ;;  %v499_v43 = vadd.f32 1e-08, %v435_v34  ;;  %v1058_v44 = vmin.f32 %v447_v33, 1.0  ;;  %v438_v5 = vld [vmem:[%s1029_s5 + $0x60] sm:$0xff]  ;;  %v441_v15 = vld [vmem:[%s1029_s5 + $0x78] sm:$0xff] }
  0x1b   : > { %900 = vmatmul.mubr.msk.bf16.gmra.mrb[4].mxu1 %vm300_vm1, %v932_v18  ;;  %943 = vrcp.f32 %v494_v31  ;;  %v449_v45 = vmax.f32 %v433_v29, 0.0  ;;  %v477_v48 = vmul.f32 9.0, %v1051_v35  ;;  %v1062_v49 = vmin.f32 %v446_v36, 1.0  ;;  %v440_v21 = vld [vmem:[%s1029_s5 + $0x70] sm:$0xff] }
  0x1c   : > { %945 = vrcp.f32 %v497_v37  ;;  %v448_v50 = vmax.f32 %v432_v32, 0.0  ;;  %v498_v51 = vadd.f32 1e-08, %v434_v41  ;;  %v475_v55 = vmul.f32 9.0, %v1054_v39 }
  0x1d   : > { %947 = vrcp.f32 %v496_v40  ;;  %v451_v57 = vmax.f32 %v435_v34, 0.0  ;;  %v501_v58 = vadd.f32 1e-08, %v437_v46  ;;  %v479_v60 = vmul.f32 9.0, %v1058_v44 }
  0x1e   : > { %949 = vrcp.f32 %v499_v43  ;;  %v1067_v61 = vmin.f32 %v449_v45, 1.0  ;;  %v500_v62 = vadd.f32 1e-08, %v436_v52  ;;  %v478_v2 = vmul.f32 9.0, %v1062_v49 }
  0x1f   : > { %v934_v47 = vpop.eup %933  ;;  %951 = vrcp.f32 %v498_v51  ;;  %v1071_v3 = vmin.f32 %v448_v50, 1.0  ;;  %v450_v4 = vmax.f32 %v434_v41, 0.0  ;;  %v1074_v9 = vmin.f32 %v451_v57, 1.0 }
  0x20   : > { %v936_v53 = vpop.eup %935  ;;  %v524_v54 = vmul.f32 %v934_v47, %v476_v38  ;;  %v453_v10 = vmax.f32 %v437_v46, 0.0  ;;  %953 = vrcp.f32 %v501_v58  ;;  %v503_v11 = vadd.f32 1e-08, %v439_v63 }
  0x21   : > { %v522_v56 = vmul.f32 %v936_v53, %v474_v42  ;;  %v481_v13 = vmul.f32 9.0, %v1067_v61  ;;  %955 = vrcp.f32 %v500_v62  ;;  %v502_v14 = vadd.f32 1e-08, %v438_v5 }
  0x22   : > { %v938_v59 = vpop.eup %937  ;;  %550 = vperm.xlu1 %921, %v524_v54   ;;  %v480_v18 = vmul.f32 9.0, %v1071_v3  ;;  %v1079_v19 = vmin.f32 %v450_v4, 1.0  ;;  %v452_v20 = vmax.f32 %v436_v52, 0.0  ;;  %v483_v23 = vmul.f32 9.0, %v1074_v9 }
  0x23   : > { %v940_v0 = vpop.eup %939  ;;  %540 = vperm.xlu0 %920, %v522_v56   ;;  %v525_v1 = vmul.f32 %v938_v59, %v477_v48  ;;  %v469_v24 = vmin.f32 %v453_v10, 1.0  ;;  %957 = vrcp.f32 %v503_v11  ;;  %v505_v25 = vadd.f32 1e-08, %v441_v15 }
  0x24   : > { %v942_v6 = vpop.eup %941  ;;  %v523_v7 = vmul.f32 %v940_v0, %v475_v55  ;;  %v455_v28 = vmax.f32 %v439_v63, 0.0  ;;  %959 = vrcp.f32 %v502_v14  ;;  %v504_v29 = vadd.f32 1e-08, %v440_v21 }
  0x25   : > { %v944_v8 = vpop.eup %943  ;;  %v527_v12 = vmul.f32 %v942_v6, %v479_v60  ;;  %v482_v33 = vmul.f32 9.0, %v1079_v19  ;;  %v468_v34 = vmin.f32 %v452_v20, 1.0  ;;  %v454_v36 = vmax.f32 %v438_v5, 0.0 }
  0x26   : > { %555 = vperm.xlu1 %921, %v525_v1   ;;  %v946_v16 = vpop.eup %945  ;;  %v526_v17 = vmul.f32 %v944_v8, %v478_v2  ;;  %v485_v38 = vmul.f32 9.0, %v469_v24  ;;  %961 = vrcp.f32 %v505_v25  ;;  %v471_v41 = vmin.f32 %v455_v28, 1.0 }
  0x27   : > { %545 = vperm.xlu0 %920, %v523_v7   ;;  %v948_v22 = vpop.eup %947  ;;  %v529_v27 = vmul.f32 %v946_v16, %v481_v13  ;;  %v457_v42 = vmax.f32 %v441_v15, 0.0  ;;  %963 = vrcp.f32 %v504_v29  ;;  %v484_v46 = vmul.f32 9.0, %v468_v34 }
  0x28   : > { %v950_v31 = vpop.eup %949  ;;  %v528_v32 = vmul.f32 %v948_v22, %v480_v18  ;;  %v470_v47 = vmin.f32 %v454_v36, 1.0  ;;  %v456_v48 = vmax.f32 %v440_v21, 0.0  ;;  %v487_v52 = vmul.f32 9.0, %v471_v41 }
  0x29   : > { %v952_v37 = vpop.eup %951  ;;  %v531_v40 = vmul.f32 %v950_v31, %v483_v23  ;;  %v473_v53 = vmin.f32 %v457_v42, 1.0 }
  0x2a   : > { %565 = vperm.xlu1 %921, %v527_v12   ;;  %v954_v43 = vpop.eup %953  ;;  %v530_v45 = vmul.f32 %v952_v37, %v482_v33  ;;  %v486_v56 = vmul.f32 9.0, %v470_v47  ;;  %v472_v57 = vmin.f32 %v456_v48, 1.0 }
  0x2b   : > { %560 = vperm.xlu0 %920, %v526_v17   ;;  %v956_v50 = vpop.eup %955  ;;  %v533_v51 = vmul.f32 %v954_v43, %v485_v38  ;;  %v489_v60 = vmul.f32 9.0, %v473_v53 }
  0x2c   : > { %v532_v55 = vmul.f32 %v956_v50, %v484_v46  ;;  %v488_v0 = vmul.f32 9.0, %v472_v57 }
  0x2d   : > { %v958_v54 = vpop.eup %957 }
  0x2e   : > { %575 = vperm.xlu1 %921, %v529_v27   ;;  %v960_v58 = vpop.eup %959  ;;  %v535_v59 = vmul.f32 %v958_v54, %v487_v52  ;;  %v1119_v27 = vld [vmem:[%s1177_s3] ss:$0 sm:$0xff] }
  0x2f   : > { %570 = vperm.xlu0 %920, %v528_v32   ;;  %v534_v63 = vmul.f32 %v960_v58, %v486_v56 }
  0x30   : > { %v962_v62 = vpop.eup %961 }
  0x31   : > { %v964_v1 = vpop.eup %963  ;;  %v537_v2 = vmul.f32 %v962_v62, %v489_v60 }
  0x32   : > { %585 = vperm.xlu1 %921, %v531_v40   ;;  %v536_v4 = vmul.f32 %v964_v1, %v488_v0 }
  0x33   : > { %580 = vperm.xlu0 %920, %v530_v45  }
  0x36   : > { %595 = vperm.xlu1 %921, %v533_v51  }
  0x37   : > { %590 = vperm.xlu0 %920, %v532_v55  }
  0x3a   : > { %605 = vperm.xlu1 %921, %v535_v59  }
  0x3b   : > { %600 = vperm.xlu0 %920, %v534_v63  }
  0x3e   : > { %615 = vperm.xlu1 %921, %v537_v2  }
  0x3f   : > { %610 = vperm.xlu0 %920, %v536_v4  }
  0x42   : > { %664 = vperm.xlu1 %921, %v1054_v39  }
  0x43   : > { %659 = vperm.xlu0 %920, %v1045_v30  }
  0x46   : > { %674 = vperm.xlu1 %921, %v1051_v35  }
  0x47   : > { %669 = vperm.xlu0 %920, %v1042_v26  }
  0x4a   : > { %684 = vperm.xlu1 %921, %v1058_v44  }
  0x4b   : > { %679 = vperm.xlu0 %920, %v1062_v49  }
  0x4e   : > { %694 = vperm.xlu1 %921, %v1067_v61  }
  0x4f   : > { %689 = vperm.xlu0 %920, %v1071_v3  }
  0x52   : > { %704 = vperm.xlu1 %921, %v1074_v9  }
  0x53   : > { %699 = vperm.xlu0 %920, %v1079_v19  }
  0x56   : > { %714 = vperm.xlu1 %921, %v469_v24  }
  0x57   : > { %709 = vperm.xlu0 %920, %v468_v34  }
  0x5a   : > { %724 = vperm.xlu1 %921, %v471_v41  }
  0x5b   : > { %719 = vperm.xlu0 %920, %v470_v47  }
  0x5e   : > { %734 = vperm.xlu1 %921, %v473_v53  }
  0x5f   : > { %729 = vperm.xlu0 %920, %v472_v57  }
  0xa1   : > { %v551_v30 = vpop.permute.xlu1 %550 }
  0xa2   : > { %v541_v26 = vpop.permute.xlu0 %540 }
  0xa5   : > { %v556_v35 = vpop.permute.xlu1 %555 }
  0xa6   : > { %v546_v39 = vpop.permute.xlu0 %545 }
  0xa9   : > { %v1094_v44 = vpop.permute.xlu1 %565 }
  0xaa   : > { %v1096_v49 = vpop.permute.xlu0 %560 }
  0xad   : > { %v1098_v61 = vpop.permute.xlu1 %575 }
  0xae   : > { %v1100_v3 = vpop.permute.xlu0 %570 }
  0xb1   : > { %v586_v5 = vpop.permute.xlu1 %585 }
  0xb2   : > { %v581_v6 = vpop.permute.xlu0 %580 }
  0xb5   : > { %v596_v7 = vpop.permute.xlu1 %595 }
  0xb6   : > { %v591_v8 = vpop.permute.xlu0 %590 }
  0xb9   : > { %v1102_v9 = vpop.permute.xlu1 %605 }
  0xba   : > { %v1104_v10 = vpop.permute.xlu0 %600 }
  0xbd   : > { %v1106_v11 = vpop.permute.xlu1 %615 }
  0xbe   : > { %v611_v12 = vpop.permute.xlu0 %610 }
  0xc1   : > { %v665_v13 = vpop.permute.xlu1 %664 }
  0xc2   : > { %v660_v14 = vpop.permute.xlu0 %659 }
  0xc5   : > { %v675_v15 = vpop.permute.xlu1 %674 }
  0xc6   : > { %v670_v16 = vpop.permute.xlu0 %669 }
  0xc9   : > { %v1108_v17 = vpop.permute.xlu1 %684 }
  0xca   : > { %v1110_v18 = vpop.permute.xlu0 %679 }
  0xcd   : > { %v1112_v19 = vpop.permute.xlu1 %694 }
  0xce   : > { %v1114_v20 = vpop.permute.xlu0 %689 }
  0xd1   : > { %v705_v21 = vpop.permute.xlu1 %704 }
  0xd2   : > { %v700_v22 = vpop.permute.xlu0 %699 }
  0xd5   : > { %v715_v23 = vpop.permute.xlu1 %714 }
  0xd6   : > { %v710_v24 = vpop.permute.xlu0 %709 }
  0xd9   : > { %v725_v62 = vpop.permute.xlu1 %724 }
  0xda   : > { %v720_v56 = vpop.permute.xlu0 %719 }
  0xe5   : > { %v889_v25 = vpop.f32.mrb[0].mxu0 }
  0xe6   : > { %v897_v28 = vpop.f32.mrb[0].mxu1  ;;  %v620_v29 = vmul.f32 %v889_v25, %v551_v30  ;;  %v363_v32 = vpop.f32.mrb[1].mxu0 }
  0xe7   : > { %v628_v31 = vmul.f32 %v897_v28, %v591_v8  ;;  %v395_v33 = vpop.f32.mrb[1].mxu1  ;;  %v618_v34 = vmul.f32 %v541_v26, %v363_v32  ;;  %v890_v37 = vpop.f32.mrb[2].mxu0 }
  0xe8   : > { %v626_v36 = vmul.f32 %v581_v6, %v395_v33  ;;  %v898_v38 = vpop.f32.mrb[2].mxu1  ;;  %v643_v40 = vadd.f32 %v1119_v27, %v620_v29  ;;  %v621_v42 = vmul.f32 %v890_v37, %v556_v35  ;;  %v366_v45 = vpop.f32.mrb[3].mxu0 }
  0xe9   : > { %v651_v41 = vadd.f32 %v1119_v27, %v628_v31  ;;  %v629_v43 = vmul.f32 %v898_v38, %v596_v7  ;;  %v398_v46 = vpop.f32.mrb[3].mxu1  ;;  %v641_v47 = vadd.f32 %v1119_v27, %v618_v34  ;;  %v619_v50 = vmul.f32 %v546_v39, %v366_v45  ;;  %v735_v29 = vpop.permute.xlu1 %734 }
  0xea   : > { %v649_v48 = vadd.f32 %v1119_v27, %v626_v36  ;;  %v627_v51 = vmul.f32 %v586_v5, %v398_v46  ;;  %v739_v52 = vmul.f32 %v670_v16, %v643_v40  ;;  %v644_v54 = vadd.f32 %v1119_v27, %v621_v42 }
  0xeb   : > { %v747_v53 = vmul.f32 %v710_v24, %v651_v41  ;;  %v652_v55 = vadd.f32 %v1119_v27, %v629_v43  ;;  %v737_v57 = vmul.f32 %v660_v14, %v641_v47  ;;  %v642_v59 = vadd.f32 %v1119_v27, %v619_v50 }
  0xec   : > { %v745_v58 = vmul.f32 %v700_v22, %v649_v48  ;;  %v650_v60 = vadd.f32 %v1119_v27, %v627_v51  ;;  %755 = vst [vmem:[%s1128_s10 + $0x10] sm:$0xff] %v739_v52  ;;  %v740_v63 = vmul.f32 %v675_v15, %v644_v54  ;;  %v730_v22 = vpop.permute.xlu0 %729 }
  0xed   : > { %763 = vst [vmem:[%s1128_s10 + $0x50] sm:$0xff] %v747_v53  ;;  %v748_v0 = vmul.f32 %v715_v23, %v652_v55  ;;  %753 = vst [vmem:[%s1128_s10] sm:$0xff] %v737_v57  ;;  %v738_v1 = vmul.f32 %v665_v13, %v642_v59  ;;  %v893_v4 = vpop.f32.mrb[4].mxu0 }
  0xee   : > { %761 = vst [vmem:[%s1128_s10 + $0x40] sm:$0xff] %v745_v58  ;;  %v746_v2 = vmul.f32 %v705_v21, %v650_v60  ;;  %v901_v30 = vpop.f32.mrb[4].mxu1  ;;  %756 = vst [vmem:[%s1128_s10 + $0x18] sm:$0xff] %v740_v63  ;;  %v624_v26 = vmul.f32 %v893_v4, %v1100_v3  ;;  %v379_v39 = vpop.f32.mrb[5].mxu0 }
  0xef   : > { %764 = vst [vmem:[%s1128_s10 + $0x58] sm:$0xff] %v748_v0  ;;  %v632_v35 = vmul.f32 %v901_v30, %v611_v12  ;;  %v411_v5 = vpop.f32.mrb[5].mxu1  ;;  %754 = vst [vmem:[%s1128_s10 + $0x8] sm:$0xff] %v738_v1  ;;  %v622_v6 = vmul.f32 %v1096_v49, %v379_v39  ;;  %v894_v8 = vpop.f32.mrb[6].mxu0 }
  0xf0   : > { %762 = vst [vmem:[%s1128_s10 + $0x48] sm:$0xff] %v746_v2  ;;  %v630_v7 = vmul.f32 %v1104_v10, %v411_v5  ;;  %v902_v14 = vpop.f32.mrb[6].mxu1  ;;  %v647_v13 = vadd.f32 %v1119_v27, %v624_v26  ;;  %v625_v16 = vmul.f32 %v894_v8, %v1098_v61  ;;  %v382_v3 = vpop.f32.mrb[7].mxu0 }
  0xf1   : > { %v655_v15 = vadd.f32 %v1119_v27, %v632_v35  ;;  %v633_v21 = vmul.f32 %v902_v14, %v1106_v11  ;;  %v414_v12 = vpop.f32.mrb[7].mxu1  ;;  %v645_v23 = vadd.f32 %v1119_v27, %v622_v6  ;;  %v623_v10 = vmul.f32 %v1094_v44, %v382_v3 }
  0xf2   : > { %v653_v49 = vadd.f32 %v1119_v27, %v630_v7  ;;  %v631_v24 = vmul.f32 %v1102_v9, %v414_v12  ;;  %v743_v25 = vmul.f32 %v1114_v20, %v647_v13  ;;  %v648_v11 = vadd.f32 %v1119_v27, %v625_v16 }
  0xf3   : > { %v751_v61 = vmul.f32 %v730_v22, %v655_v15  ;;  %v656_v28 = vadd.f32 %v1119_v27, %v633_v21  ;;  %v741_v31 = vmul.f32 %v1110_v18, %v645_v23  ;;  %v646_v44 = vadd.f32 %v1119_v27, %v623_v10 }
  0xf4   : > { %v749_v32 = vmul.f32 %v720_v56, %v653_v49  ;;  %v654_v33 = vadd.f32 %v1119_v27, %v631_v24  ;;  %759 = vst [vmem:[%s1128_s10 + $0x30] sm:$0xff] %v743_v25  ;;  %v744_v9 = vmul.f32 %v1112_v19, %v648_v11 }
  0xf5   : > { %767 = vst [vmem:[%s1128_s10 + $0x70] sm:$0xff] %v751_v61  ;;  %v752_v20 = vmul.f32 %v735_v29, %v656_v28  ;;  %757 = vst [vmem:[%s1128_s10 + $0x20] sm:$0xff] %v741_v31  ;;  %v742_v34 = vmul.f32 %v1108_v17, %v646_v44 }
  0xf6   : > { %765 = vst [vmem:[%s1128_s10 + $0x60] sm:$0xff] %v749_v32  ;;  %v750_v36 = vmul.f32 %v725_v62, %v654_v33  ;;  %760 = vst [vmem:[%s1128_s10 + $0x38] sm:$0xff] %v744_v9 }
  0xf7   : > { %768 = vst [vmem:[%s1128_s10 + $0x78] sm:$0xff] %v752_v20  ;;  %758 = vst [vmem:[%s1128_s10 + $0x28] sm:$0xff] %v742_v34 }
  0xf8   : > { %766 = vst [vmem:[%s1128_s10 + $0x68] sm:$0xff] %v750_v36 }
  0xf9 PF: > { %s14_s15 = sadd.s32 1, %s971_s15  }
  0xfa   : > { %p11_p4 = scmp.ge.s32.totalorder %s14_s15, 6  }
  0xfc   :  { %13 = sbr.rel (!%p11_p4) target bundleno = 1 (0x1), region = 69 }

</bundles_post_ra>
